<compile_context>
chip_gen: v7x
topology: tpu7x:2x2x1
jax: 0.10.0
libtpu: 0.0.40
codegen_flags: <defaults>
</compile_context>

<pallas_src>
import jax
import jax.numpy as jnp
from jax.experimental import pallas as pl
from jax.experimental.pallas import tpu as pltpu


def _fill_kernel(v_ref, o_ref):
    """Broadcast-fill one dense output tile with the precomputed scalar.

    v_ref: (1,) f32 in SMEM -- the batch-invariant network output.
    o_ref: (TR, C) f32 VMEM output tile (lane-dense: C is a multiple of 128,
           or equals the full array extent for tiny batches).
    """
    o_ref[...] = jnp.broadcast_to(v_ref[0], o_ref.shape)


def _output_layout(B, *, max_cols=1024, row_tile=512):
    """Pick a lane-dense 2-D slab (R, C), row tile TR and padding for B elems."""
    if B <= max_cols:
        # One full-array block (block_shape == array shape satisfies (8,128)).
        return 1, B, 1, 0

    C = None
    for c in (1024, 512, 256, 128):
        if c <= max_cols and B % c == 0:
            C = c  # no padding, final reshape to (B, 1) is free
            break
    if C is None:
        C = max_cols  # pad up; one small slice at the end

    R = pl.cdiv(B, C)
    pad = R * C - B

    TR = min(row_tile, R)
    if TR < R:
        TR = max(8, (TR // 8) * 8)  # partial row blocks must be sublane-aligned
    # Prefer >= 2 blocks so the "parallel" axis can feed both v7x TensorCores.
    if R > 8 and pl.cdiv(R, TR) < 2:
        TR = max(8, -(-((R + 1) // 2) // 8) * 8)
    return R, C, TR, pad


def value_net_forward(batch_size, w1, b1, w2, b2, *, small_batch_threshold=0):
    """Replicates Value_net.forward(batch_size) -> (batch_size, 1) float32.

    w1: (4, 32)  b1: (32,)  w2: (32, 1)  b2: (1,)   ((in, out) layout).
    NOTE: batch_size must be a static Python int (as in the PyTorch module,
    where it is a plain int argument, not a tensor) -- not jittable over it.
    """
    B = int(batch_size)

    # x == ones(B, 4)  =>  x @ W1 is just the column sums of W1.  The whole
    # network is one scalar; compute it once in plain JAX (~70 FLOPs).
    h = jnp.maximum(
        jnp.sum(w1.astype(jnp.float32), axis=0) + b1.astype(jnp.float32), 0.0)
    v = jnp.abs(
        jnp.dot(h, w2.astype(jnp.float32).reshape(32))
        + b2.astype(jnp.float32).reshape(()))

    if B <= small_batch_threshold:
        # Tiny batches: a pallas_call launch costs more than the whole fill.
        return jnp.full((B, 1), v, jnp.float32)

    R, C, TR, pad = _output_layout(B)
    grid = (pl.cdiv(R, TR),)

    out2d = pl.pallas_call(
        _fill_kernel,
        out_shape=jax.ShapeDtypeStruct((R, C), jnp.float32),
        grid=grid,
        in_specs=[pl.BlockSpec(memory_space=pltpu.MemorySpace.SMEM)],
        out_specs=pl.BlockSpec((TR, C), lambda i: (i, 0)),
        compiler_params=pltpu.CompilerParams(
            # Output tiles are independent: shard across TCs on v7x (no-op on
            # v5e/v6e).  Per-step buffers (~2 MiB x2) fit every generation's
            # default scoped VMEM, so no vmem_limit_bytes override is needed.
            dimension_semantics=("parallel",),
        ),
    )(v.reshape(1))

    flat = out2d.reshape(R * C)
    if pad:
        flat = flat[:B]
    return flat.reshape(B, 1)


def init_params(key):
    """Deterministic init mimicking PyTorch nn.Linear default
    (U[-1/sqrt(fan_in), 1/sqrt(fan_in)]), stored as (in_features, out_features)."""
    k1, k2, k3, k4 = jax.random.split(key, 4)
    bound1 = 1.0 / jnp.sqrt(4.0)
    bound2 = 1.0 / jnp.sqrt(32.0)
    w1 = jax.random.uniform(k1, (4, 32), jnp.float32, -bound1, bound1)
    b1 = jax.random.uniform(k2, (32,), jnp.float32, -bound1, bound1)
    w2 = jax.random.uniform(k3, (32, 1), jnp.float32, -bound2, bound2)
    b2 = jax.random.uniform(k4, (1,), jnp.float32, -bound2, bound2)
    return w1, b1, w2, b2


if __name__ == "__main__":
    key = jax.random.PRNGKey(0)
    w1, b1, w2, b2 = init_params(key)

    # Small shape consistent with forward(batch_size); goes through the kernel.
    batch_size = 8
    out = jax.block_until_ready(value_net_forward(batch_size, w1, b1, w2, b2))

    # Pure-JAX reference (same math as the PyTorch module).
    x = jnp.ones((batch_size, 4), jnp.float32)
    ref = jnp.abs(jnp.maximum(x @ w1 + b1, 0.0) @ w2 + b2)
    assert out.shape == (batch_size, 1)
    assert jnp.allclose(out, ref, atol=1e-5, rtol=1e-5)

    # Ragged large-batch path (B not a multiple of 128): exercises the dense
    # 2-D slab tiling plus the padded-tail slice-back.
    big_b = 3000
    out_big = jax.block_until_ready(value_net_forward(big_b, w1, b1, w2, b2))
    assert out_big.shape == (big_b, 1)
    assert jnp.allclose(out_big, jnp.broadcast_to(ref[:1], (big_b, 1)),
                        atol=1e-5, rtol=1e-5)

    print("KERNEL_OK")
</pallas_src>

<mosaic_0001>
module attributes {stable_mosaic.version = 11 : i64} {
  func.func @_fill_kernel(%arg0: i32, %arg1: memref<1xf32, #tpu.memory_space<smem>>, %arg2: memref<1x8xf32, #tpu.memory_space<vmem>>) attributes {dimension_semantics = [#tpu.dimension_semantics<parallel>], iteration_bounds = array<i64: 1>, scalar_prefetch = 0 : i64, scratch_operands = 0 : i64, tpu.core_type = #tpu.core_type<tc>, window_params = [{transform_indices = @transform_0, window_bounds = array<i64: 1>}, {transform_indices = @transform_1, window_bounds = array<i64: 1, 8>}]} {
    %c0 = arith.constant 0 : index
    %0 = memref.load %arg1[%c0] : memref<1xf32, #tpu.memory_space<smem>>
    %1 = vector.broadcast %0 : f32 to vector<1x8xf32>
    %c0_0 = arith.constant 0 : index
    %c0_1 = arith.constant 0 : index
    %2 = vector.load %arg2[%c0_0, %c0_1] : memref<1x8xf32, #tpu.memory_space<vmem>>, vector<1x8xf32>
    tpu.vector_store %arg2[%c0_0, %c0_1], %1 {strides = array<i32>} : memref<1x8xf32, #tpu.memory_space<vmem>>, vector<1x8xf32>,
    return
  }
  func.func @transform_0(%arg0: i32) -> i32 {
    %c0_i32 = arith.constant 0 : i32
    %c0_i32_0 = arith.constant 0 : i32
    return %c0_i32 : i32
  }
  func.func @transform_1(%arg0: i32) -> (i32, i32) {
    %c0_i32 = arith.constant 0 : i32
    %c0_i32_0 = arith.constant 0 : i32
    return %arg0, %c0_i32 : i32, i32
  }
}

</mosaic_0001>

<bundles_post_ra>
// kernel: tpu_custom_call.1
= control target key start
LH: loop header
LB: loop body
LE: loop exit
PB: predicated region body
PF: predicated region fallthrough
CT: control target
= control target key end

     0   :  { %vm12_vm0 = vcmask 57344   ;;  %s79_s0 = inlined_call_operand.<no memory space> [shape: f32[1], index: 0, kind: input, shape index: {}]   ;;  %s80_s1 = inlined_call_operand.hbm [shape: f32[1,8], index: 1, kind: output, shape index: {}]  }
   0x1   :  { %v11_v0 = vstv %s79_s0 }
   0x2   :  { %7 = vsyncpa [#allocation4], 0  ;;  %13 = vst.msk [vmem:[#allocation3] sm:$0x1] %vm12_vm0, %v11_v0  ;;  %s53_s8 = smov [#allocation3]  }
   0x3   :  { %s20_s9 = sshll.u32 %s53_s8, 4  ;;  %s21_s9 = int_to_ptr.vmem [resolvable:$true] %s20_s9 }
   0x4   :  { %s29_s10 = scalar_lea.vmem %s21_s9, 16  ;;  %s33_s11 = scalar_lea.vmem %s21_s9, 32 }
   0x5   :  { %p30_p0 = scmp.ne.s32.totalorder %s21_s9, %s29_s10  ;;  %p34_p1 = scmp.lt.s32.totalorder %s21_s9, %s21_s9 }
   0x6   :  { %p35_p2 = scmp.lt.s32.totalorder %s33_s11, %s29_s10 }
   0x8   :  { %p36_p3 = por %p35_p2, %p34_p1 }
   0xa   :  { %p37_p4 = pnand %p36_p3, %p30_p0 }
   0xc   :  { %40 = shalt.err (!%p37_p4)
}
   0xd   :  { %s41_s14 = scalar_lea.hbm %s80_s1, 16 }
   0xe   :  { %p42_p5 = scmp.ne.s32.totalorder %s80_s1, %s41_s14  ;;  %p45_p6 = scmp.lt.u32.totalorder %s41_s14, %s80_s1 }
  0x10   :  { %p47_p7 = pnand %p45_p6, %p42_p5 }
  0x12   :  { %50 = shalt.err (!%p47_p7)
}
  0x13   :  { %23 = dma.vmem_to_hbm [thread:$0]  %s21_s9, 16, %s80_s1, [#allocation4]  }
  0x14   :  { %51 = dma.done.wait [#allocation4], 16  }
  0x15   :  { %52 = vsyncadd [#allocation4], 4294967280 }
  0x16   :  { %27 = vsyncpa [#allocation4], 1 }

</bundles_post_ra>
